<compile_context>
chip_gen: v7x
topology: tpu7x:2x2x1
jax: 0.10.0
libtpu: 0.0.40
codegen_flags: <defaults>
</compile_context>

<pallas_src>
import functools

import jax
import jax.numpy as jnp
from jax.experimental import pallas as pl
from jax.experimental.pallas import tpu as pltpu

LANES = 128
SUBLANES = 8


def _sirmse_partial_kernel(pred_ref, gt_ref, out_ref, *, eps, rows_valid,
                           tile_rows, tiles_per_core, need_row_mask):
    c = pl.program_id(0)   # core-split axis ("parallel")
    i = pl.program_id(1)   # reduction axis ("arbitrary")

    @pl.when(i == 0)
    def _():
        out_ref[...] = jnp.zeros_like(out_ref)

    pred = pred_ref[...].astype(jnp.float32)   # (tile_rows, LANES)
    gt = gt_ref[...].astype(jnp.float32)

    valid = gt > 0.0
    if need_row_mask:
        # Ragged last tile: rows at/after `rows_valid` contain garbage.
        tile_idx = c * tiles_per_core + i
        row_ids = tile_idx * tile_rows + jax.lax.broadcasted_iota(
            jnp.int32, (tile_rows, LANES), 0)
        valid = valid & (row_ids < rows_valid)

    # log of masked (non-positive / garbage) values yields NaN/inf but is
    # discarded by the select -> same semantics as the PyTorch boolean mask.
    log_diff = jnp.where(valid, jnp.log(pred + eps) - jnp.log(gt + eps), 0.0)
    cnt = valid.astype(jnp.float32)

    k = tile_rows // SUBLANES
    d3 = log_diff.reshape(k, SUBLANES, LANES)
    c3 = cnt.reshape(k, SUBLANES, LANES)

    # Vreg-shaped partial accumulation (VPU adds only).
    out_ref[0, 0, :, :] += jnp.sum(d3, axis=0)
    out_ref[0, 1, :, :] += jnp.sum(d3 * d3, axis=0)
    out_ref[0, 2, :, :] += jnp.sum(c3, axis=0)


def si_rmse_loss(pred_depth, gt_depth, *, loss_weight=1.0, eps=1e-3):
    """Pallas equivalent of SiRMSELoss.forward (returns a scalar f32)."""
    assert pred_depth.shape == gt_depth.shape

    pred_flat = pred_depth.reshape(-1)   # keep native dtype; cast in-kernel
    gt_flat = gt_depth.reshape(-1)
    n = pred_flat.shape[0]

    chunk = SUBLANES * LANES                 # 1024 elements
    rows8 = (n // chunk) * SUBLANES          # rows forming complete (8,128) groups
    bulk = rows8 * LANES

    s = jnp.float32(0.0)
    ss = jnp.float32(0.0)
    cnt = jnp.float32(0.0)

    if rows8 > 0:
        # Tile from a VMEM budget: up to 2048 rows (1 MiB f32 per input block).
        tile_rows = min(2048, rows8)                 # rows8 % 8 == 0 -> ok
        num_tiles = pl.cdiv(rows8, tile_rows)
        core_split = 2 if (num_tiles >= 2 and num_tiles % 2 == 0) else 1
        tiles_per_core = num_tiles // core_split
        need_row_mask = (rows8 % tile_rows) != 0

        if bulk == n:
            pred2d = pred_flat.reshape(rows8, LANES)
            gt2d = gt_flat.reshape(rows8, LANES)
        else:
            pred2d = pred_flat[:bulk].reshape(rows8, LANES)
            gt2d = gt_flat[:bulk].reshape(rows8, LANES)

        kernel = functools.partial(
            _sirmse_partial_kernel,
            eps=float(eps),
            rows_valid=int(rows8),
            tile_rows=int(tile_rows),
            tiles_per_core=int(tiles_per_core),
            need_row_mask=bool(need_row_mask),
        )

        partials = pl.pallas_call(
            kernel,
            out_shape=jax.ShapeDtypeStruct(
                (core_split, 3, SUBLANES, LANES), jnp.float32),
            grid_spec=pltpu.PrefetchScalarGridSpec(
                num_scalar_prefetch=0,
                grid=(core_split, tiles_per_core),
                in_specs=[
                    pl.BlockSpec((tile_rows, LANES),
                                 lambda c, i: (c * tiles_per_core + i, 0)),
                    pl.BlockSpec((tile_rows, LANES),
                                 lambda c, i: (c * tiles_per_core + i, 0)),
                ],
                out_specs=pl.BlockSpec((1, 3, SUBLANES, LANES),
                                       lambda c, i: (c, 0, 0, 0)),
            ),
            compiler_params=pltpu.CompilerParams(
                dimension_semantics=("parallel", "arbitrary")),
        )(pred2d, gt2d)

        sums = jnp.sum(partials, axis=(0, 2, 3))   # (3,)
        s = s + sums[0]
        ss = ss + sums[1]
        cnt = cnt + sums[2]

    # Tail (< 8*128 + 128 elements) folded in with plain JAX.
    if bulk < n:
        pt = pred_flat[bulk:].astype(jnp.float32)
        gtt = gt_flat[bulk:].astype(jnp.float32)
        vm = gtt > 0.0
        dt = jnp.where(vm, jnp.log(pt + eps) - jnp.log(gtt + eps), 0.0)
        s = s + jnp.sum(dt)
        ss = ss + jnp.sum(dt * dt)
        cnt = cnt + jnp.sum(vm.astype(jnp.float32))

    # sirmse = sqrt( sum(d^2)/N - (sum d)^2 / N^2 ); clamp tiny negative from
    # f32 rounding.  N == 0 yields NaN, matching the reference behavior.
    var = jnp.maximum(ss / cnt - (s * s) / (cnt * cnt), 0.0)
    return jnp.float32(loss_weight) * jnp.sqrt(var)


def _reference(pred_depth, gt_depth, *, loss_weight=1.0, eps=1e-3):
    """Plain-JAX reference mirroring the PyTorch module."""
    valid = gt_depth > 0
    log_diff = jnp.where(
        valid,
        jnp.log(jnp.where(valid, pred_depth, 1.0) + eps)
        - jnp.log(jnp.where(valid, gt_depth, 1.0) + eps),
        0.0,
    ).astype(jnp.float32)
    n = jnp.sum(valid.astype(jnp.float32))
    s = jnp.sum(log_diff)
    ss = jnp.sum(log_diff * log_diff)
    return loss_weight * jnp.sqrt(ss / n - (s * s) / (n * n))


def _make_inputs(key, shape):
    k1, k2, k3 = jax.random.split(key, 3)
    pred = jax.random.uniform(k1, shape, jnp.float32, minval=0.1, maxval=10.0)
    gt = jax.random.uniform(k2, shape, jnp.float32, minval=0.1, maxval=10.0)
    invalid = jax.random.uniform(k3, shape) < 0.3   # ~30% invalid pixels
    gt = jnp.where(invalid, 0.0, gt)
    return pred, gt


if __name__ == "__main__":
    key = jax.random.PRNGKey(0)
    ka, kb = jax.random.split(key, 2)

    # Primary case: NCHW depth maps, divisible size -> pure kernel path.
    pred_depth, gt_depth = _make_inputs(ka, (2, 4, 16, 16))
    loss = si_rmse_loss(pred_depth, gt_depth, loss_weight=1.0)
    loss = jax.block_until_ready(loss)
    ref = _reference(pred_depth, gt_depth, loss_weight=1.0)
    assert jnp.allclose(loss, ref, rtol=1e-5, atol=1e-6), (loss, ref)

    # Odd-sized case: exercises kernel bulk + plain-JAX tail combine.
    pred2, gt2 = _make_inputs(kb, (2, 3, 17, 31))
    loss2 = jax.block_until_ready(si_rmse_loss(pred2, gt2, loss_weight=1.0))
    ref2 = _reference(pred2, gt2, loss_weight=1.0)
    assert jnp.allclose(loss2, ref2, rtol=1e-5, atol=1e-6), (loss2, ref2)

    print("KERNEL_OK")
</pallas_src>

<mosaic_0001>
module attributes {stable_mosaic.version = 11 : i64} {
  func.func @_sirmse_partial_kernel(%arg0: i32, %arg1: i32, %arg2: memref<16x128xf32, #tpu.memory_space<vmem>>, %arg3: memref<16x128xf32, #tpu.memory_space<vmem>>, %arg4: memref<1x3x8x128xf32, #tpu.memory_space<vmem>>) attributes {dimension_semantics = [#tpu.dimension_semantics<parallel>, #tpu.dimension_semantics<arbitrary>], iteration_bounds = array<i64: 1, 1>, scalar_prefetch = 0 : i64, scratch_operands = 0 : i64, tpu.core_type = #tpu.core_type<tc>, window_params = [{transform_indices = @transform_0, window_bounds = array<i64: 16, 128>}, {transform_indices = @transform_1, window_bounds = array<i64: 16, 128>}, {transform_indices = @transform_2, window_bounds = array<i64: 1, 3, 8, 128>}]} {
    %c0_i32 = arith.constant 0 : i32
    %0 = arith.cmpi eq, %arg1, %c0_i32 : i32
    %1 = arith.extui %0 : i1 to i32
    %c0_i32_0 = arith.constant 0 : i32
    %2 = arith.cmpi ne, %1, %c0_i32_0 : i32
    scf.if %2 {
      %cst_32 = arith.constant 0.000000e+00 : f32
      %42 = vector.broadcast %cst_32 : f32 to vector<1x3x8x128xf32>
      %c0_33 = arith.constant 0 : index
      %c0_34 = arith.constant 0 : index
      %c0_35 = arith.constant 0 : index
      %c0_36 = arith.constant 0 : index
      %43 = vector.load %arg4[%c0_33, %c0_34, %c0_35, %c0_36] : memref<1x3x8x128xf32, #tpu.memory_space<vmem>>, vector<1x3x8x128xf32>
      tpu.vector_store %arg4[%c0_33, %c0_34, %c0_35, %c0_36], %42 {strides = array<i32>} : memref<1x3x8x128xf32, #tpu.memory_space<vmem>>, vector<1x3x8x128xf32>,
    } else {
    }
    %c0 = arith.constant 0 : index
    %c0_1 = arith.constant 0 : index
    %3 = vector.load %arg2[%c0, %c0_1] : memref<16x128xf32, #tpu.memory_space<vmem>>, vector<16x128xf32>
    %c0_2 = arith.constant 0 : index
    %c0_3 = arith.constant 0 : index
    %4 = vector.load %arg3[%c0_2, %c0_3] : memref<16x128xf32, #tpu.memory_space<vmem>>, vector<16x128xf32>
    %cst = arith.constant 0.000000e+00 : f32
    %5 = vector.broadcast %cst : f32 to vector<16x128xf32>
    %6 = arith.cmpf ogt, %4, %5 : vector<16x128xf32>
    %cst_4 = arith.constant 1.000000e-03 : f32
    %7 = vector.broadcast %cst_4 : f32 to vector<16x128xf32>
    %8 = arith.addf %3, %7 : vector<16x128xf32>
    %9 = math.log %8 : vector<16x128xf32>
    %cst_5 = arith.constant 1.000000e-03 : f32
    %10 = vector.broadcast %cst_5 : f32 to vector<16x128xf32>
    %11 = arith.addf %4, %10 : vector<16x128xf32>
    %12 = math.log %11 : vector<16x128xf32>
    %13 = arith.subf %9, %12 : vector<16x128xf32>
    %cst_6 = arith.constant 0.000000e+00 : f32
    %14 = vector.broadcast %cst_6 : f32 to vector<16x128xf32>
    %15 = arith.select %6, %13, %14 : vector<16x128xi1>, vector<16x128xf32>
    %16 = arith.extui %6 : vector<16x128xi1> to vector<16x128xi32>
    %17 = arith.sitofp %16 : vector<16x128xi32> to vector<16x128xf32>
    %18 = vector.shape_cast %15 : vector<16x128xf32> to vector<2x8x128xf32>
    %19 = vector.shape_cast %17 : vector<16x128xf32> to vector<2x8x128xf32>
    %c0_7 = arith.constant 0 : index
    %c0_8 = arith.constant 0 : index
    %c0_9 = arith.constant 0 : index
    %c0_10 = arith.constant 0 : index
    %20 = vector.load %arg4[%c0_7, %c0_8, %c0_9, %c0_10] : memref<1x3x8x128xf32, #tpu.memory_space<vmem>>, vector<1x1x8x128xf32>
    %21 = vector.shape_cast %20 : vector<1x1x8x128xf32> to vector<8x128xf32>
    %cst_11 = arith.constant dense<0.000000e+00> : vector<8x128xf32>
    %22 = vector.multi_reduction <add>, %18, %cst_11 [0] : vector<2x8x128xf32> to vector<8x128xf32>
    %23 = arith.addf %21, %22 : vector<8x128xf32>
    %c0_12 = arith.constant 0 : index
    %c0_13 = arith.constant 0 : index
    %c0_14 = arith.constant 0 : index
    %c0_15 = arith.constant 0 : index
    %24 = vector.load %arg4[%c0_12, %c0_13, %c0_14, %c0_15] : memref<1x3x8x128xf32, #tpu.memory_space<vmem>>, vector<1x1x8x128xf32>
    %25 = vector.shape_cast %24 : vector<1x1x8x128xf32> to vector<8x128xf32>
    %26 = vector.shape_cast %23 : vector<8x128xf32> to vector<1x1x8x128xf32>
    tpu.vector_store %arg4[%c0_12, %c0_13, %c0_14, %c0_15], %26 {strides = array<i32>} : memref<1x3x8x128xf32, #tpu.memory_space<vmem>>, vector<1x1x8x128xf32>,
    %c0_16 = arith.constant 0 : index
    %c1 = arith.constant 1 : index
    %c0_17 = arith.constant 0 : index
    %c0_18 = arith.constant 0 : index
    %27 = vector.load %arg4[%c0_16, %c1, %c0_17, %c0_18] : memref<1x3x8x128xf32, #tpu.memory_space<vmem>>, vector<1x1x8x128xf32>
    %28 = vector.shape_cast %27 : vector<1x1x8x128xf32> to vector<8x128xf32>
    %29 = arith.mulf %18, %18 : vector<2x8x128xf32>
    %cst_19 = arith.constant dense<0.000000e+00> : vector<8x128xf32>
    %30 = vector.multi_reduction <add>, %29, %cst_19 [0] : vector<2x8x128xf32> to vector<8x128xf32>
    %31 = arith.addf %28, %30 : vector<8x128xf32>
    %c0_20 = arith.constant 0 : index
    %c1_21 = arith.constant 1 : index
    %c0_22 = arith.constant 0 : index
    %c0_23 = arith.constant 0 : index
    %32 = vector.load %arg4[%c0_20, %c1_21, %c0_22, %c0_23] : memref<1x3x8x128xf32, #tpu.memory_space<vmem>>, vector<1x1x8x128xf32>
    %33 = vector.shape_cast %32 : vector<1x1x8x128xf32> to vector<8x128xf32>
    %34 = vector.shape_cast %31 : vector<8x128xf32> to vector<1x1x8x128xf32>
    tpu.vector_store %arg4[%c0_20, %c1_21, %c0_22, %c0_23], %34 {strides = array<i32>} : memref<1x3x8x128xf32, #tpu.memory_space<vmem>>, vector<1x1x8x128xf32>,
    %c0_24 = arith.constant 0 : index
    %c2 = arith.constant 2 : index
    %c0_25 = arith.constant 0 : index
    %c0_26 = arith.constant 0 : index
    %35 = vector.load %arg4[%c0_24, %c2, %c0_25, %c0_26] : memref<1x3x8x128xf32, #tpu.memory_space<vmem>>, vector<1x1x8x128xf32>
    %36 = vector.shape_cast %35 : vector<1x1x8x128xf32> to vector<8x128xf32>
    %cst_27 = arith.constant dense<0.000000e+00> : vector<8x128xf32>
    %37 = vector.multi_reduction <add>, %19, %cst_27 [0] : vector<2x8x128xf32> to vector<8x128xf32>
    %38 = arith.addf %36, %37 : vector<8x128xf32>
    %c0_28 = arith.constant 0 : index
    %c2_29 = arith.constant 2 : index
    %c0_30 = arith.constant 0 : index
    %c0_31 = arith.constant 0 : index
    %39 = vector.load %arg4[%c0_28, %c2_29, %c0_30, %c0_31] : memref<1x3x8x128xf32, #tpu.memory_space<vmem>>, vector<1x1x8x128xf32>
    %40 = vector.shape_cast %39 : vector<1x1x8x128xf32> to vector<8x128xf32>
    %41 = vector.shape_cast %38 : vector<8x128xf32> to vector<1x1x8x128xf32>
    tpu.vector_store %arg4[%c0_28, %c2_29, %c0_30, %c0_31], %41 {strides = array<i32>} : memref<1x3x8x128xf32, #tpu.memory_space<vmem>>, vector<1x1x8x128xf32>,
    return
  }
  func.func @transform_0(%arg0: i32, %arg1: i32) -> (i32, i32) {
    %c1_i32 = arith.constant 1 : i32
    %0 = arith.muli %arg0, %c1_i32 : i32
    %1 = arith.addi %0, %arg1 : i32
    %c0_i32 = arith.constant 0 : i32
    %c0_i32_0 = arith.constant 0 : i32
    return %1, %c0_i32 : i32, i32
  }
  func.func @transform_1(%arg0: i32, %arg1: i32) -> (i32, i32) {
    %c1_i32 = arith.constant 1 : i32
    %0 = arith.muli %arg0, %c1_i32 : i32
    %1 = arith.addi %0, %arg1 : i32
    %c0_i32 = arith.constant 0 : i32
    %c0_i32_0 = arith.constant 0 : i32
    return %1, %c0_i32 : i32, i32
  }
  func.func @transform_2(%arg0: i32, %arg1: i32) -> (i32, i32, i32, i32) {
    %c0_i32 = arith.constant 0 : i32
    %c0_i32_0 = arith.constant 0 : i32
    %c0_i32_1 = arith.constant 0 : i32
    %c0_i32_2 = arith.constant 0 : i32
    return %arg0, %c0_i32, %c0_i32_0, %c0_i32_1 : i32, i32, i32, i32
  }
}

</mosaic_0001>

<bundles_post_ra>
// kernel: tpu_custom_call.1
= control target key start
LH: loop header
LB: loop body
LE: loop exit
PB: predicated region body
PF: predicated region fallthrough
CT: control target
= control target key end

     0   :  { %7 = vsyncpa [#allocation3], 0  ;;  %s277_s0 = inlined_call_operand.hbm [shape: f32[16,128], index: 0, kind: input, shape index: {}]   ;;  %s278_s1 = inlined_call_operand.hbm [shape: f32[16,128], index: 1, kind: input, shape index: {}]   ;;  %s279_s2 = inlined_call_operand.hbm [shape: f32[1,3,8,128], index: 2, kind: output, shape index: {}]  }
   0x1   :  { %8 = vsyncpa [#allocation6], 0 }
   0x2   :  { %9 = vsyncpa [#allocation4], 0  ;;  %s207_s9 = smov [#allocation2]   ;;  %s135_s13 = scalar_lea.hbm %s277_s0, 256 }
   0x3   :  { %s19_s10 = sshll.u32 %s207_s9, 4  ;;  %p136_p0 = scmp.ne.s32.totalorder %s277_s0, %s135_s13  ;;  %s20_s10 = int_to_ptr.vmem [resolvable:$true] %s19_s10 }
   0x4   :  { %p139_p1 = scmp.lt.u32.totalorder %s135_s13, %s277_s0 }
   0x6   :  { %p141_p2 = pnand %p139_p1, %p136_p0 }
   0x8   :  { %144 = shalt.err (!%p141_p2)
}
   0x9   :  { %s145_s18 = scalar_lea.vmem %s20_s10, 256  ;;  %p150_p4 = scmp.lt.s32.totalorder %s20_s10, %s20_s10 }
   0xa   :  { %p146_p3 = scmp.ne.s32.totalorder %s20_s10, %s145_s18  ;;  %p151_p5 = scmp.lt.s32.totalorder %s145_s18, %s145_s18 }
   0xc   :  { %p152_p6 = por %p151_p5, %p150_p4 }
   0xe   :  { %p153_p7 = pnand %p152_p6, %p146_p3 }
  0x10   :  { %156 = shalt.err (!%p153_p7)
}
  0x11   :  { %s208_s19 = smov 128   ;;  %s209_s20 = smov 8  }
  0x12   :  { %25 = dma.hbm_to_vmem [thread:$0]  %s277_s0, 256, %s20_s10, [#allocation3], %s208_s19, %s208_s19, %s209_s20  }
  0x13   :  { %s210_s23 = smov [#allocation5]   ;;  %s157_s27 = scalar_lea.hbm %s278_s1, 256 }
  0x14   :  { %s35_s24 = sshll.u32 %s210_s23, 4  ;;  %p158_p8 = scmp.ne.s32.totalorder %s278_s1, %s157_s27  ;;  %s36_s24 = int_to_ptr.vmem [resolvable:$true] %s35_s24 }
  0x15   :  { %p161_p9 = scmp.lt.u32.totalorder %s157_s27, %s278_s1 }
  0x17   :  { %p163_p10 = pnand %p161_p9, %p158_p8 }
  0x19   :  { %166 = shalt.err (!%p163_p10)
}
  0x1a   :  { %s167_s4 = scalar_lea.vmem %s36_s24, 256  ;;  %p172_p12 = scmp.lt.s32.totalorder %s36_s24, %s36_s24 }
  0x1b   :  { %p168_p11 = scmp.ne.s32.totalorder %s36_s24, %s167_s4  ;;  %p173_p13 = scmp.lt.s32.totalorder %s167_s4, %s167_s4 }
  0x1d   :  { %p174_p0 = por %p173_p13, %p172_p12 }
  0x1f   :  { %p175_p1 = pnand %p174_p0, %p168_p11 }
  0x21   :  { %178 = shalt.err (!%p175_p1)
}
  0x22   :  { %41 = dma.hbm_to_vmem [thread:$0]  %s278_s1, 256, %s36_s24, [#allocation6], %s208_s19, %s208_s19, %s209_s20  }
  0x23   :  { %201 = dma.done.wait [#allocation3], 256  }
  0x24   :  { %202 = vsyncadd [#allocation3], 4294967040 }
  0x25   :  { %203 = dma.done.wait [#allocation6], 256  }
  0x26   :  { %204 = vsyncadd [#allocation6], 4294967040  ;;  %v59_v0 = vld [vmem:[#allocation2] sm:$0xff]  ;;  %v60_v1 = vld [vmem:[#allocation2 + $0x8] sm:$0xff]  ;;  %v211_v8 = vmov 0.0   ;;  %s212_s1 = smov [#allocation7]  }
  0x27   :  { %v61_v2 = vld [vmem:[#allocation5] sm:$0xff]  ;;  %v62_v3 = vld [vmem:[#allocation5 + $0x8] sm:$0xff]  ;;  %v65_v4 = vadd.f32 0.001, %v59_v0  ;;  %v66_v5 = vadd.f32 0.001, %v60_v1 }
  0x28   :  { %vm63_vm0 = vcmp.gt.f32.partialorder %v61_v2, 0.0  ;;  %vm64_vm1 = vcmp.gt.f32.partialorder %v62_v3, 0.0  ;;  %v71_v6 = vadd.f32 0.001, %v61_v2  ;;  %v72_v7 = vadd.f32 0.001, %v62_v3 }
  0x29   :  { %v119_v9 = vsel %vm63_vm0, 1.0, %v211_v8  ;;  %127 = vlog2.f32 %v65_v4  ;;  %v120_v10 = vsel %vm64_vm1, 1.0, %v211_v8  ;;  %s106_s6 = sshll.u32 %s212_s1, 4  ;;  %s107_s6 = int_to_ptr.vmem [resolvable:$true] %s106_s6 }
  0x2a   :  { %129 = vlog2.f32 %v66_v5  ;;  %v98_v11 = vadd.f32 %v120_v10, %v119_v9  ;;  %s179_s7 = scalar_lea.vmem %s107_s6, 384  ;;  %p184_p3 = scmp.lt.s32.totalorder %s107_s6, %s107_s6 }
  0x2b   :  { %131 = vlog2.f32 %v71_v6  ;;  %p180_p2 = scmp.ne.s32.totalorder %s107_s6, %s179_s7  ;;  %p185_p4 = scmp.lt.s32.totalorder %s179_s7, %s179_s7 }
  0x2c   :  { %133 = vlog2.f32 %v72_v7  ;;  %100 = vst [vmem:[#allocation7 + $0x10] sm:$0xff] %v98_v11 }
  0x2d   :  { %p186_p5 = por %p185_p4, %p184_p3 }
  0x2f   :  { %p187_p6 = pnand %p186_p5, %p180_p2 }
  0x33   :  { %v128_v12 = vpop.eup %127 }
  0x34   :  { %v130_v13 = vpop.eup %129  ;;  %v68_v14 = vmul.f32 0.6931472, %v128_v12 }
  0x35   :  { %v132_v15 = vpop.eup %131  ;;  %v70_v16 = vmul.f32 0.6931472, %v130_v13 }
  0x36   :  { %v134_v17 = vpop.eup %133  ;;  %v74_v18 = vmul.f32 0.6931472, %v132_v15 }
  0x37   :  { %v76_v19 = vmul.f32 0.6931472, %v134_v17 }
  0x38   :  { %v77_v20 = vsub.f32 %v68_v14, %v74_v18 }
  0x39   :  { %v78_v21 = vsub.f32 %v70_v16, %v76_v19 }
  0x3a   :  { %v79_v22 = vsel %vm63_vm0, %v77_v20, 0.0 }
  0x3b   :  { %v80_v23 = vsel %vm64_vm1, %v78_v21, 0.0  ;;  %v91_v24 = vmul.f32 %v79_v22, %v79_v22 }
  0x3c   :  { %v86_v25 = vadd.f32 %v80_v23, %v79_v22  ;;  %v92_v26 = vmul.f32 %v80_v23, %v80_v23 }
  0x3e   :  { %v93_v27 = vadd.f32 %v92_v26, %v91_v24  ;;  %88 = vst [vmem:[#allocation7] sm:$0xff] %v86_v25 }
  0x40   :  { %95 = vst [vmem:[#allocation7 + $0x8] sm:$0xff] %v93_v27 }
  0x41   :  { %190 = shalt.err (!%p187_p6)
}
  0x42   :  { %s191_s10 = scalar_lea.hbm %s279_s2, 384 }
  0x43   :  { %p192_p7 = scmp.ne.s32.totalorder %s279_s2, %s191_s10  ;;  %p195_p8 = scmp.lt.u32.totalorder %s191_s10, %s279_s2 }
  0x45   :  { %p197_p9 = pnand %p195_p8, %p192_p7 }
  0x47   :  { %200 = shalt.err (!%p197_p9)
}
  0x48   :  { %112 = dma.vmem_to_hbm [thread:$0]  %s107_s6, 384, %s279_s2, [#allocation4], %s208_s19, %s208_s19, %s209_s20  }
  0x49   :  { %205 = dma.done.wait [#allocation4], 384  }
  0x4a   :  { %206 = vsyncadd [#allocation4], 4294966912 }
  0x4b   :  { %116 = vsyncpa [#allocation3], 1 }
  0x4c   :  { %117 = vsyncpa [#allocation6], 1 }
  0x4d   :  { %118 = vsyncpa [#allocation4], 1 }

</bundles_post_ra>
